<compile_context>
chip_gen: v7x
topology: tpu7x:2x2x1
jax: 0.10.0
libtpu: 0.0.40
codegen_flags: <defaults>
</compile_context>

<pallas_src>
import jax
import jax.numpy as jnp
from jax import lax
from jax.experimental import pallas as pl
from jax.experimental.pallas import tpu as pltpu


# ----------------------------------------------------------------------------
# Kernel
# ----------------------------------------------------------------------------
def basic_block_kernel(x_ref, t1_ref, b1_ref, t2_ref, b2_ref, out_ref):
    """One batch image of the BasicBlock forward.

    x_ref   : (1, H, W*C)    f32   image rows, lane-dense ((W, C) flattened)
    t1_ref  : (3, W*C, W*C)  bf16  conv1 per-ky row-Toeplitz weights (BN1 scale folded)
    b1_ref  : (1, W*C)       f32   BN1 bias, tiled over W
    t2_ref  : (3, W*C, W*C)  bf16  conv2 per-ky row-Toeplitz weights (BN2 scale folded)
    b2_ref  : (1, W*C)       f32   BN2 bias, tiled over W
    out_ref : (1, H, W*C)    f32   output image, lane-dense
    """
    _, h, wc = x_ref.shape
    x = x_ref[0]                                        # (H, WC) f32
    zrow = jnp.zeros((1, wc), jnp.float32)

    # H-direction zero halo of conv1 ('SAME' padding) applied in-kernel.
    xp = jnp.concatenate([zrow, x, zrow], axis=0)       # (H+2, WC)

    # ---- conv1 + bn1 (scale folded) + bias + relu : 3 accumulating MXU dots
    h1 = b1_ref[...]                                    # (1, WC) -> broadcasts
    for ky in range(3):
        h1 = h1 + jnp.dot(xp[ky:ky + h].astype(jnp.bfloat16), t1_ref[ky],
                          preferred_element_type=jnp.float32)
    h1 = jnp.maximum(h1, 0.0)                           # (H, WC)

    # ---- conv2 + bn2 (scale folded) + bias ---------------------------------
    # Zero rows added here are exactly conv2's 'SAME' zero padding in H.
    h1p = jnp.concatenate([zrow, h1, zrow], axis=0)     # (H+2, WC)
    o = b2_ref[...]
    for ky in range(3):
        o = o + jnp.dot(h1p[ky:ky + h].astype(jnp.bfloat16), t2_ref[ky],
                        preferred_element_type=jnp.float32)

    # ---- residual add + relu, lane-dense store ------------------------------
    out_ref[0] = jnp.maximum(o + x, 0.0)


# ----------------------------------------------------------------------------
# Wrapper-side parameter algebra (glue, not the hot path)
# ----------------------------------------------------------------------------
def _fold_bn(w, gamma, beta, mean, var, eps=1e-5):
    """Fold eval-mode BatchNorm into the conv weight (scale) and a bias."""
    s = gamma / jnp.sqrt(var + eps)
    w_hwio = jnp.transpose(w, (2, 3, 1, 0)) * s[None, None, None, :]
    return w_hwio, beta - mean * s


def _conv_row_taps(w_hwio, W):
    """Per-ky (W*Cin, W*Cout) row-Toeplitz matrices for a 3x3 'SAME' conv.

    For a lane-dense activation row r[wi*Cin + ci] = x[h + ky - 1, wi, ci],
    (r @ T_ky)[wo*Cout + co] is the ky-tap contribution to the conv output at
    (h, wo, co), with zero padding in W handled structurally.
    """
    KH, KW, Cin, Cout = w_hwio.shape
    wi = jnp.arange(W)[:, None]
    wo = jnp.arange(W)[None, :]
    taps = []
    for ky in range(KH):
        T = jnp.zeros((W, Cin, W, Cout), w_hwio.dtype)
        for kx in range(KW):
            sel = (wi - wo == kx - 1).astype(w_hwio.dtype)        # (W, W)
            T = T + sel[:, None, :, None] * w_hwio[ky, kx][None, :, None, :]
        taps.append(T.reshape(W * Cin, W * Cout))
    return jnp.stack(taps)                                        # (3, W*Cin, W*Cout)


@jax.jit
def basic_block_forward(x_nhwc, params):
    """NHWC in / NHWC out BasicBlock forward (lane-dense Pallas kernel).

    Layout note: the tensor stays channels-last end to end (no NCHW transpose
    or pad round trips around the kernel); NCHW callers should transpose once
    at the model boundary.
    """
    w1, g1, be1, m1, v1, w2, g2, be2, m2, v2 = params
    N, H, W, C = x_nhwc.shape
    assert w1.shape[0] == C and w1.shape[1] == C, \
        "identity path requires inplanes == planes"
    # TODO(synk): stride>1 / downsample branch of BasicBlock not implemented.

    w1_hwio, b1 = _fold_bn(w1, g1, be1, m1, v1)
    w2_hwio, b2 = _fold_bn(w2, g2, be2, m2, v2)
    WC = W * C
    t1 = _conv_row_taps(w1_hwio, W).astype(jnp.bfloat16)    # (3, WC, WC) bf16
    t2 = _conv_row_taps(w2_hwio, W).astype(jnp.bfloat16)
    b1_row = jnp.tile(b1, W)[None, :]                       # (1, WC) f32
    b2_row = jnp.tile(b2, W)[None, :]

    # Contiguous (W, C) -> W*C flatten only; no transpose, no pad.
    xrows = x_nhwc.astype(jnp.float32).reshape(N, H, WC)

    flops = 12 * N * H * WC * WC                            # 2 convs x 3 taps
    bytes_accessed = (4 * 2 * N * H * WC          # x in + out (f32)
                      + 2 * 2 * 3 * WC * WC       # t1 + t2 (bf16)
                      + 4 * 2 * WC)               # biases (f32)

    out_rows = pl.pallas_call(
        basic_block_kernel,
        out_shape=jax.ShapeDtypeStruct((N, H, WC), jnp.float32),
        grid=(N,),
        in_specs=[
            pl.BlockSpec((1, H, WC), lambda n: (n, 0, 0)),
            # Constant-index weights/biases: DMA'd once, resident across steps.
            pl.BlockSpec((3, WC, WC), lambda n: (0, 0, 0)),
            pl.BlockSpec((1, WC), lambda n: (0, 0)),
            pl.BlockSpec((3, WC, WC), lambda n: (0, 0, 0)),
            pl.BlockSpec((1, WC), lambda n: (0, 0)),
        ],
        out_specs=pl.BlockSpec((1, H, WC), lambda n: (n, 0, 0)),
        compiler_params=pltpu.CompilerParams(
            dimension_semantics=("parallel",),
            vmem_limit_bytes=32 * 1024 * 1024,
        ),
        cost_estimate=pl.CostEstimate(
            flops=flops, transcendentals=0, bytes_accessed=bytes_accessed),
    )(xrows, t1, b1_row, t2, b2_row)

    return out_rows.reshape(N, H, W, C)


# ----------------------------------------------------------------------------
# Pure-JAX reference + test harness
# ----------------------------------------------------------------------------
def reference_forward(x_nhwc, params):
    """Reference BasicBlock forward using lax.conv (for correctness check)."""
    w1, g1, be1, m1, v1, w2, g2, be2, m2, v2 = params
    eps = 1e-5
    x = x_nhwc.astype(jnp.float32)
    dn = lax.conv_dimension_numbers(x.shape, (3, 3, 1, 1), ("NHWC", "HWIO", "NHWC"))

    def conv(inp, w):
        return lax.conv_general_dilated(inp, jnp.transpose(w, (2, 3, 1, 0)),
                                        (1, 1), "SAME", dimension_numbers=dn)

    def bn(inp, g, b, m, v):
        return (inp - m) / jnp.sqrt(v + eps) * g + b

    out = jnp.maximum(bn(conv(x, w1), g1, be1, m1, v1), 0.0)
    out = bn(conv(out, w2), g2, be2, m2, v2)
    return jnp.maximum(out + x, 0.0)


def make_params(key, inplanes, planes):
    ks = jax.random.split(key, 8)
    w1 = jax.random.normal(ks[0], (planes, inplanes, 3, 3), jnp.float32) * 0.1
    w2 = jax.random.normal(ks[1], (planes, planes, 3, 3), jnp.float32) * 0.1
    g1 = 1.0 + 0.1 * jax.random.normal(ks[2], (planes,), jnp.float32)
    be1 = 0.1 * jax.random.normal(ks[3], (planes,), jnp.float32)
    m1 = 0.1 * jax.random.normal(ks[4], (planes,), jnp.float32)
    v1 = jnp.abs(1.0 + 0.1 * jax.random.normal(ks[5], (planes,), jnp.float32))
    g2 = 1.0 + 0.1 * jax.random.normal(ks[6], (planes,), jnp.float32)
    be2 = 0.1 * jax.random.normal(ks[7], (planes,), jnp.float32)
    m2 = jnp.zeros((planes,), jnp.float32)
    v2 = jnp.ones((planes,), jnp.float32)
    return (w1, g1, be1, m1, v1, w2, g2, be2, m2, v2)


if __name__ == "__main__":
    key = jax.random.PRNGKey(0)
    kx, kp = jax.random.split(key)

    N, H, W, C = 2, 16, 16, 8          # inplanes == planes == 8, stride 1
    x = jax.random.normal(kx, (N, H, W, C), jnp.float32)   # NHWC, lane-dense
    params = make_params(kp, C, C)

    out = jax.block_until_ready(basic_block_forward(x, params))
    ref = jax.block_until_ready(reference_forward(x, params))

    assert out.shape == (N, H, W, C)
    err = jnp.max(jnp.abs(out - ref))
    # bf16 matmul operands (f32 accumulation) -> loosened parity tolerance.
    assert jnp.allclose(out, ref, atol=5e-2, rtol=5e-2), f"max abs diff = {err}"

    print("KERNEL_OK")
</pallas_src>

<mosaic_0001>
module attributes {stable_mosaic.version = 11 : i64} {
  func.func @basic_block_kernel(%arg0: i32, %arg1: memref<1x16x128xf32, #tpu.memory_space<vmem>>, %arg2: memref<3x128x128xbf16, #tpu.memory_space<vmem>>, %arg3: memref<1x128xf32, #tpu.memory_space<vmem>>, %arg4: memref<3x128x128xbf16, #tpu.memory_space<vmem>>, %arg5: memref<1x128xf32, #tpu.memory_space<vmem>>, %arg6: memref<1x16x128xf32, #tpu.memory_space<vmem>>) attributes {dimension_semantics = [#tpu.dimension_semantics<parallel>], iteration_bounds = array<i64: 2>, scalar_prefetch = 0 : i64, scratch_operands = 0 : i64, tpu.core_type = #tpu.core_type<tc>, window_params = [{transform_indices = @transform_0, window_bounds = array<i64: 1, 16, 128>}, {pipeline_mode = #tpu.pipeline_mode<synchronous>, transform_indices = @transform_1, window_bounds = array<i64: 3, 128, 128>}, {pipeline_mode = #tpu.pipeline_mode<synchronous>, transform_indices = @transform_2, window_bounds = array<i64: 1, 128>}, {pipeline_mode = #tpu.pipeline_mode<synchronous>, transform_indices = @transform_3, window_bounds = array<i64: 3, 128, 128>}, {pipeline_mode = #tpu.pipeline_mode<synchronous>, transform_indices = @transform_4, window_bounds = array<i64: 1, 128>}, {transform_indices = @transform_5, window_bounds = array<i64: 1, 16, 128>}]} {
    %c0 = arith.constant 0 : index
    %c0_0 = arith.constant 0 : index
    %c0_1 = arith.constant 0 : index
    %0 = vector.load %arg1[%c0, %c0_0, %c0_1] : memref<1x16x128xf32, #tpu.memory_space<vmem>>, vector<1x16x128xf32>
    %1 = vector.shape_cast %0 : vector<1x16x128xf32> to vector<16x128xf32>
    %cst = arith.constant 0.000000e+00 : f32
    %2 = vector.broadcast %cst : f32 to vector<1x128xf32>
    %3 = tpu.concatenate %2, %1, %2 in 0 : vector<1x128xf32>, vector<16x128xf32>, vector<1x128xf32> -> vector<18x128xf32>
    %c0_2 = arith.constant 0 : index
    %c0_3 = arith.constant 0 : index
    %4 = vector.load %arg3[%c0_2, %c0_3] : memref<1x128xf32, #tpu.memory_space<vmem>>, vector<1x128xf32>
    %5 = vector.extract_strided_slice %3 {offsets = [0, 0], sizes = [16, 128], strides = [1, 1]} : vector<18x128xf32> to vector<16x128xf32>
    %6 = arith.truncf %5 : vector<16x128xf32> to vector<16x128xbf16>
    %c0_4 = arith.constant 0 : index
    %c0_5 = arith.constant 0 : index
    %c0_6 = arith.constant 0 : index
    %7 = vector.load %arg2[%c0_4, %c0_5, %c0_6] : memref<3x128x128xbf16, #tpu.memory_space<vmem>>, vector<1x128x128xbf16>
    %8 = vector.shape_cast %7 : vector<1x128x128xbf16> to vector<128x128xbf16>
    %cst_7 = arith.constant dense<0.000000e+00> : vector<16x128xf32>
    %9 = tpu.matmul %6, %8, %cst_7 {dimension_numbers = #tpu.dot_dimension_numbers<[1], [0], [0], [1], [0, 0, 1, 1], [], []>} : vector<16x128xbf16>, vector<128x128xbf16>, vector<16x128xf32> -> vector<16x128xf32>
    %10 = vector.broadcast %4 : vector<1x128xf32> to vector<16x128xf32>
    %11 = arith.addf %10, %9 : vector<16x128xf32>
    %12 = vector.extract_strided_slice %3 {offsets = [1, 0], sizes = [16, 128], strides = [1, 1]} : vector<18x128xf32> to vector<16x128xf32>
    %13 = arith.truncf %12 : vector<16x128xf32> to vector<16x128xbf16>
    %c1 = arith.constant 1 : index
    %c0_8 = arith.constant 0 : index
    %c0_9 = arith.constant 0 : index
    %14 = vector.load %arg2[%c1, %c0_8, %c0_9] : memref<3x128x128xbf16, #tpu.memory_space<vmem>>, vector<1x128x128xbf16>
    %15 = vector.shape_cast %14 : vector<1x128x128xbf16> to vector<128x128xbf16>
    %cst_10 = arith.constant dense<0.000000e+00> : vector<16x128xf32>
    %16 = tpu.matmul %13, %15, %cst_10 {dimension_numbers = #tpu.dot_dimension_numbers<[1], [0], [0], [1], [0, 0, 1, 1], [], []>} : vector<16x128xbf16>, vector<128x128xbf16>, vector<16x128xf32> -> vector<16x128xf32>
    %17 = arith.addf %11, %16 : vector<16x128xf32>
    %18 = vector.extract_strided_slice %3 {offsets = [2, 0], sizes = [16, 128], strides = [1, 1]} : vector<18x128xf32> to vector<16x128xf32>
    %19 = arith.truncf %18 : vector<16x128xf32> to vector<16x128xbf16>
    %c2 = arith.constant 2 : index
    %c0_11 = arith.constant 0 : index
    %c0_12 = arith.constant 0 : index
    %20 = vector.load %arg2[%c2, %c0_11, %c0_12] : memref<3x128x128xbf16, #tpu.memory_space<vmem>>, vector<1x128x128xbf16>
    %21 = vector.shape_cast %20 : vector<1x128x128xbf16> to vector<128x128xbf16>
    %cst_13 = arith.constant dense<0.000000e+00> : vector<16x128xf32>
    %22 = tpu.matmul %19, %21, %cst_13 {dimension_numbers = #tpu.dot_dimension_numbers<[1], [0], [0], [1], [0, 0, 1, 1], [], []>} : vector<16x128xbf16>, vector<128x128xbf16>, vector<16x128xf32> -> vector<16x128xf32>
    %23 = arith.addf %17, %22 : vector<16x128xf32>
    %cst_14 = arith.constant 0.000000e+00 : f32
    %24 = vector.broadcast %cst_14 : f32 to vector<16x128xf32>
    %25 = arith.maximumf %23, %24 : vector<16x128xf32>
    %26 = tpu.concatenate %2, %25, %2 in 0 : vector<1x128xf32>, vector<16x128xf32>, vector<1x128xf32> -> vector<18x128xf32>
    %c0_15 = arith.constant 0 : index
    %c0_16 = arith.constant 0 : index
    %27 = vector.load %arg5[%c0_15, %c0_16] : memref<1x128xf32, #tpu.memory_space<vmem>>, vector<1x128xf32>
    %28 = vector.extract_strided_slice %26 {offsets = [0, 0], sizes = [16, 128], strides = [1, 1]} : vector<18x128xf32> to vector<16x128xf32>
    %29 = arith.truncf %28 : vector<16x128xf32> to vector<16x128xbf16>
    %c0_17 = arith.constant 0 : index
    %c0_18 = arith.constant 0 : index
    %c0_19 = arith.constant 0 : index
    %30 = vector.load %arg4[%c0_17, %c0_18, %c0_19] : memref<3x128x128xbf16, #tpu.memory_space<vmem>>, vector<1x128x128xbf16>
    %31 = vector.shape_cast %30 : vector<1x128x128xbf16> to vector<128x128xbf16>
    %cst_20 = arith.constant dense<0.000000e+00> : vector<16x128xf32>
    %32 = tpu.matmul %29, %31, %cst_20 {dimension_numbers = #tpu.dot_dimension_numbers<[1], [0], [0], [1], [0, 0, 1, 1], [], []>} : vector<16x128xbf16>, vector<128x128xbf16>, vector<16x128xf32> -> vector<16x128xf32>
    %33 = vector.broadcast %27 : vector<1x128xf32> to vector<16x128xf32>
    %34 = arith.addf %33, %32 : vector<16x128xf32>
    %35 = vector.extract_strided_slice %26 {offsets = [1, 0], sizes = [16, 128], strides = [1, 1]} : vector<18x128xf32> to vector<16x128xf32>
    %36 = arith.truncf %35 : vector<16x128xf32> to vector<16x128xbf16>
    %c1_21 = arith.constant 1 : index
    %c0_22 = arith.constant 0 : index
    %c0_23 = arith.constant 0 : index
    %37 = vector.load %arg4[%c1_21, %c0_22, %c0_23] : memref<3x128x128xbf16, #tpu.memory_space<vmem>>, vector<1x128x128xbf16>
    %38 = vector.shape_cast %37 : vector<1x128x128xbf16> to vector<128x128xbf16>
    %cst_24 = arith.constant dense<0.000000e+00> : vector<16x128xf32>
    %39 = tpu.matmul %36, %38, %cst_24 {dimension_numbers = #tpu.dot_dimension_numbers<[1], [0], [0], [1], [0, 0, 1, 1], [], []>} : vector<16x128xbf16>, vector<128x128xbf16>, vector<16x128xf32> -> vector<16x128xf32>
    %40 = arith.addf %34, %39 : vector<16x128xf32>
    %41 = vector.extract_strided_slice %26 {offsets = [2, 0], sizes = [16, 128], strides = [1, 1]} : vector<18x128xf32> to vector<16x128xf32>
    %42 = arith.truncf %41 : vector<16x128xf32> to vector<16x128xbf16>
    %c2_25 = arith.constant 2 : index
    %c0_26 = arith.constant 0 : index
    %c0_27 = arith.constant 0 : index
    %43 = vector.load %arg4[%c2_25, %c0_26, %c0_27] : memref<3x128x128xbf16, #tpu.memory_space<vmem>>, vector<1x128x128xbf16>
    %44 = vector.shape_cast %43 : vector<1x128x128xbf16> to vector<128x128xbf16>
    %cst_28 = arith.constant dense<0.000000e+00> : vector<16x128xf32>
    %45 = tpu.matmul %42, %44, %cst_28 {dimension_numbers = #tpu.dot_dimension_numbers<[1], [0], [0], [1], [0, 0, 1, 1], [], []>} : vector<16x128xbf16>, vector<128x128xbf16>, vector<16x128xf32> -> vector<16x128xf32>
    %46 = arith.addf %40, %45 : vector<16x128xf32>
    %47 = arith.addf %46, %1 : vector<16x128xf32>
    %cst_29 = arith.constant 0.000000e+00 : f32
    %48 = vector.broadcast %cst_29 : f32 to vector<16x128xf32>
    %49 = arith.maximumf %47, %48 : vector<16x128xf32>
    %c0_30 = arith.constant 0 : index
    %c0_31 = arith.constant 0 : index
    %c0_32 = arith.constant 0 : index
    %50 = vector.load %arg6[%c0_30, %c0_31, %c0_32] : memref<1x16x128xf32, #tpu.memory_space<vmem>>, vector<1x16x128xf32>
    %51 = vector.shape_cast %50 : vector<1x16x128xf32> to vector<16x128xf32>
    %52 = vector.shape_cast %49 : vector<16x128xf32> to vector<1x16x128xf32>
    tpu.vector_store %arg6[%c0_30, %c0_31, %c0_32], %52 {strides = array<i32>} : memref<1x16x128xf32, #tpu.memory_space<vmem>>, vector<1x16x128xf32>,
    return
  }
  func.func @transform_0(%arg0: i32) -> (i32, i32, i32) {
    %c0_i32 = arith.constant 0 : i32
    %c0_i32_0 = arith.constant 0 : i32
    %c0_i32_1 = arith.constant 0 : i32
    return %arg0, %c0_i32, %c0_i32_0 : i32, i32, i32
  }
  func.func @transform_1(%arg0: i32) -> (i32, i32, i32) {
    %c0_i32 = arith.constant 0 : i32
    %c0_i32_0 = arith.constant 0 : i32
    %c0_i32_1 = arith.constant 0 : i32
    %c0_i32_2 = arith.constant 0 : i32
    return %c0_i32, %c0_i32_0, %c0_i32_1 : i32, i32, i32
  }
  func.func @transform_2(%arg0: i32) -> (i32, i32) {
    %c0_i32 = arith.constant 0 : i32
    %c0_i32_0 = arith.constant 0 : i32
    %c0_i32_1 = arith.constant 0 : i32
    return %c0_i32, %c0_i32_0 : i32, i32
  }
  func.func @transform_3(%arg0: i32) -> (i32, i32, i32) {
    %c0_i32 = arith.constant 0 : i32
    %c0_i32_0 = arith.constant 0 : i32
    %c0_i32_1 = arith.constant 0 : i32
    %c0_i32_2 = arith.constant 0 : i32
    return %c0_i32, %c0_i32_0, %c0_i32_1 : i32, i32, i32
  }
  func.func @transform_4(%arg0: i32) -> (i32, i32) {
    %c0_i32 = arith.constant 0 : i32
    %c0_i32_0 = arith.constant 0 : i32
    %c0_i32_1 = arith.constant 0 : i32
    return %c0_i32, %c0_i32_0 : i32, i32
  }
  func.func @transform_5(%arg0: i32) -> (i32, i32, i32) {
    %c0_i32 = arith.constant 0 : i32
    %c0_i32_0 = arith.constant 0 : i32
    %c0_i32_1 = arith.constant 0 : i32
    return %arg0, %c0_i32, %c0_i32_0 : i32, i32, i32
  }
}

</mosaic_0001>

<bundles_post_ra>
// kernel: tile.13
= control target key start
LH: loop header
LB: loop body
LE: loop exit
PB: predicated region body
PF: predicated region fallthrough
CT: control target
= control target key end

     0   :  { %s28_s0 = inlined_call_operand.vmem [shape: f32[8], index: 0, kind: input, shape index: {}]   ;;  %s29_s1 = inlined_call_operand.vmem [shape: f32[16,8], index: 1, kind: output, shape index: {}]  }
   0x1   :  { %v4_v0 = vld [vmem:[%s28_s0] ss:$0 sm:$0xff] }
   0x2   :  { %5 = vst [vmem:[%s29_s1] sm:$0xff] %v4_v0  ;;  %8 = vst [vmem:[%s29_s1 + $0x8] sm:$0xff] %v4_v0 }

// kernel: tile.14
= control target key start
LH: loop header
LB: loop body
LE: loop exit
PB: predicated region body
PF: predicated region fallthrough
CT: control target
= control target key end

     0   :  { %s131_s10 = smov 120   ;;  %s132_s11 = smov 104   ;;  %vm3_vm0 = vcmask 64512   ;;  %vm9_vm1 = vcmask 1048512   ;;  %vm15_vm2 = vcmask 982912   ;;  %vm21_vm3 = vcmask 917312   ;;  %s207_s0 = inlined_call_operand.vmem [shape: f32[16,8], index: 0, kind: input, shape index: {}]   ;;  %s208_s1 = inlined_call_operand.vmem [shape: f32[1,128], index: 1, kind: output, shape index: {}]  }
   0x1   :  { %v101_v0 = vld [vmem:[%s207_s0 + $0xf] sm:$0x1]   ;;  %v103_v1 = vld [vmem:[%s207_s0 + $0xd] sm:$0x1]   ;;  %v102_v2 = vld [vmem:[%s207_s0 + $0xe] sm:$0x1]  }
   0x2   :  { %7 = vrot.lane.b32.xlu0 %v101_v0, %s131_s10  ;;  %19 = vrot.lane.b32.xlu1 %v103_v1, %s132_s11  ;;  %v104_v3 = vld [vmem:[%s207_s0 + $0xc] sm:$0x1]   ;;  %s133_s16 = smov 112   ;;  %s134_s17 = smov 96   ;;  %v105_v4 = vld [vmem:[%s207_s0 + $0xb] sm:$0x1]  }
   0x3   :  { %v106_v5 = vld [vmem:[%s207_s0 + $0xa] sm:$0x1]   ;;  %v2_v6 = vld [vmem:[%s207_s0] sm:$0x1]   ;;  %s135_s24 = smov 88   ;;  %s136_s25 = smov 80  }
   0x4   :  { %4 = vst.msk [vmem:[#allocation0] sm:$0x1] %vm3_vm0, %v2_v6   ;;  %v107_v7 = vld [vmem:[%s207_s0 + $0x9] sm:$0x1]   ;;  %v108_v8 = vld [vmem:[%s207_s0 + $0x8] sm:$0x1]  }
   0x5   :  { %s137_s30 = smov 72   ;;  %s138_s2 = smov 64   ;;  %v109_v9 = vld [vmem:[%s207_s0 + $0x7] sm:$0x1]   ;;  %v110_v10 = vld [vmem:[%s207_s0 + $0x6] sm:$0x1]  }
   0x6   :  { %13 = vrot.lane.b32.xlu0 %v102_v2, %s133_s16  ;;  %25 = vrot.lane.b32.xlu1 %v104_v3, %s134_s17  ;;  %s139_s7 = smov 56   ;;  %s140_s8 = smov 48   ;;  %v111_v11 = vld [vmem:[%s207_s0 + $0x5] sm:$0x1]   ;;  %v112_v12 = vld [vmem:[%s207_s0 + $0x4] sm:$0x1]  }
   0x7   :  { %s141_s13 = smov 40   ;;  %s142_s14 = smov 32   ;;  %v113_v13 = vld [vmem:[%s207_s0 + $0x3] sm:$0x1]   ;;  %v114_v14 = vld [vmem:[%s207_s0 + $0x2] sm:$0x1]  }
   0x8   :  { %s143_s19 = smov 24   ;;  %s144_s20 = smov 16   ;;  %v115_v15 = vld [vmem:[%s207_s0 + $0x1] sm:$0x1]   ;;  %vm27_vm4 = vcmask 851712   ;;  %vm33_vm5 = vcmask 786112  }
   0x9   :  { %s145_s0 = smov 8   ;;  %vm39_vm6 = vcmask 720512   ;;  %vm45_vm7 = vcmask 654912   ;;  %vm51_vm8 = vcmask 589312   ;;  %vm57_vm9 = vcmask 523712  }
   0xa   :  { %31 = vrot.lane.b32.xlu0 %v105_v4, %s135_s24  ;;  %37 = vrot.lane.b32.xlu1 %v106_v5, %s136_s25  ;;  %vm63_vm10 = vcmask 458112   ;;  %vm69_vm11 = vcmask 392512   ;;  %vm75_vm12 = vcmask 326912   ;;  %vm81_vm13 = vcmask 261312  }
   0xb   :  { %vm87_vm14 = vcmask 195712   ;;  %vm93_vm15 = vcmask 130112  }
   0xe   :  { %43 = vrot.lane.b32.xlu0 %v107_v7, %s137_s30  ;;  %49 = vrot.lane.b32.xlu1 %v108_v8, %s138_s2 }
  0x12   :  { %55 = vrot.lane.b32.xlu0 %v109_v9, %s139_s7  ;;  %61 = vrot.lane.b32.xlu1 %v110_v10, %s140_s8 }
  0x16   :  { %67 = vrot.lane.b32.xlu0 %v111_v11, %s141_s13  ;;  %73 = vrot.lane.b32.xlu1 %v112_v12, %s142_s14 }
  0x1a   :  { %79 = vrot.lane.b32.xlu0 %v113_v13, %s143_s19  ;;  %85 = vrot.lane.b32.xlu1 %v114_v14, %s144_s20 }
  0x1e   :  { %91 = vrot.lane.b32.xlu0 %v115_v15, %s145_s0 }
  0x74   :  { %v8_v16 = vpop.permute.xlu0 %7   ;;  %v20_v17 = vpop.permute.xlu1 %19  }
  0x75   :  { %10 = vst.msk [vmem:[#allocation0] sm:$0x1] %vm9_vm1, %v8_v16  }
  0x78   :  { %v14_v18 = vpop.permute.xlu0 %13   ;;  %v26_v19 = vpop.permute.xlu1 %25  }
  0x79   :  { %16 = vst.msk [vmem:[#allocation0] sm:$0x1] %vm15_vm2, %v14_v18  }
  0x7a   :  { %22 = vst.msk [vmem:[#allocation0] sm:$0x1] %vm21_vm3, %v20_v17  }
  0x7b   :  { %28 = vst.msk [vmem:[#allocation0] sm:$0x1] %vm27_vm4, %v26_v19  }
  0x7c   :  { %v32_v20 = vpop.permute.xlu0 %31   ;;  %v38_v21 = vpop.permute.xlu1 %37  }
  0x7d   :  { %34 = vst.msk [vmem:[#allocation0] sm:$0x1] %vm33_vm5, %v32_v20  }
  0x7e   :  { %40 = vst.msk [vmem:[#allocation0] sm:$0x1] %vm39_vm6, %v38_v21  }
  0x80   :  { %v44_v22 = vpop.permute.xlu0 %43   ;;  %v50_v23 = vpop.permute.xlu1 %49  }
  0x81   :  { %46 = vst.msk [vmem:[#allocation0] sm:$0x1] %vm45_vm7, %v44_v22  }
  0x82   :  { %52 = vst.msk [vmem:[#allocation0] sm:$0x1] %vm51_vm8, %v50_v23  }
  0x84   :  { %v56_v24 = vpop.permute.xlu0 %55   ;;  %v62_v25 = vpop.permute.xlu1 %61  }
  0x85   :  { %58 = vst.msk [vmem:[#allocation0] sm:$0x1] %vm57_vm9, %v56_v24  }
  0x86   :  { %64 = vst.msk [vmem:[#allocation0] sm:$0x1] %vm63_vm10, %v62_v25  }
  0x88   :  { %v68_v26 = vpop.permute.xlu0 %67   ;;  %v74_v27 = vpop.permute.xlu1 %73  }
  0x89   :  { %70 = vst.msk [vmem:[#allocation0] sm:$0x1] %vm69_vm11, %v68_v26  }
  0x8a   :  { %76 = vst.msk [vmem:[#allocation0] sm:$0x1] %vm75_vm12, %v74_v27  }
  0x8c   :  { %v80_v28 = vpop.permute.xlu0 %79   ;;  %v86_v29 = vpop.permute.xlu1 %85  }
  0x8d   :  { %82 = vst.msk [vmem:[#allocation0] sm:$0x1] %vm81_vm13, %v80_v28  }
  0x8e   :  { %88 = vst.msk [vmem:[#allocation0] sm:$0x1] %vm87_vm14, %v86_v29  }
  0x90   :  { %v92_v30 = vpop.permute.xlu0 %91  }
  0x91   :  { %94 = vst.msk [vmem:[#allocation0] sm:$0x1] %vm93_vm15, %v92_v30  }
  0x98   :  { %v98_v31 = vld [vmem:[#allocation0] sm:$0x1] }
  0x99   :  { %100 = vst [vmem:[%s208_s1] sm:$0x1] %v98_v31 }

// kernel: basic_block_forward.1
= control target key start
LH: loop header
LB: loop body
LE: loop exit
PB: predicated region body
PF: predicated region fallthrough
CT: control target
= control target key end

     0   :  { %s1435_s18 = smov 0   ;;  %s1696_s0 = inlined_call_operand.vmem [shape: f32[2,16,128], index: 0, kind: input, shape index: {}]   ;;  %s1697_s1 = inlined_call_operand.vmem [shape: bf16[3,128,128], index: 1, kind: input, shape index: {}]   ;;  %s1698_s2 = inlined_call_operand.vmem [shape: f32[1,128], index: 2, kind: input, shape index: {}]   ;;  %s1699_s3 = inlined_call_operand.vmem [shape: bf16[3,128,128], index: 3, kind: input, shape index: {}]   ;;  %s1700_s4 = inlined_call_operand.vmem [shape: f32[1,128], index: 4, kind: input, shape index: {}]   ;;  %s1701_s5 = inlined_call_operand.vmem [shape: f32[2,16,128], index: 5, kind: output, shape index: {}]  }
   0x1 LB: > { %s1016_s19 = sadd.s32 4294967295, %s1400_s18   ;;  %p1020_p0 = scmp.ge.s32.totalorder %s1400_s18, 1  ;;  %s1400_s18 = sphi %s1435_s18, %s15_s18  }
   0x2   : > { %p187_p1 = scmp.lt.s32.totalorder %s1400_s18, 3 }
   0x4   : > { %p188_p2 = pnand %p1020_p0, %p187_p1 }
   0x5   : > { %v1346_v0 = vld [vmem:[%s1697_s1] sm:$0xff] (!%p188_p2)   ;;  %v1402_v1 = vmov (!%p188_p2), 0.0   ;;  %v1347_v2 = vld [vmem:[%s1697_s1 + $0x8] sm:$0xff] (!%p188_p2)   ;;  %vm1403_vm0 = vmmov (!%p188_p2), 0   ;;  %p215_p3 = scmp.lt.s32.totalorder (!%p188_p2), %s1016_s19, 1  ;;  %v1348_v3 = vld [vmem:[%s1697_s1 + $0x10] sm:$0xff] (!%p188_p2)  }
   0x6   : > { %191 = sbr.rel (%p188_p2) target bundleno = 610 (0x262), region = 40  ;;  %1205 = vmatprep.subr.bf16.mxu0 (!%p188_p2), %v1402_v1  ;;  %1265 = vmatprep.subr.bf16.mxu1 (!%p188_p2), %v1402_v1  ;;  %v1349_v4 = vld [vmem:[%s1697_s1 + $0x18] sm:$0xff] (!%p188_p2)   ;;  %v1350_v5 = vld [vmem:[%s1697_s1 + $0x20] sm:$0xff] (!%p188_p2)   ;;  %v1351_v6 = vld [vmem:[%s1697_s1 + $0x28] sm:$0xff] (!%p188_p2)   ;;  %vm230_vm1 = vcmask (!%p188_p2), 1040384   ;;  %vm1404_vm3 = vmmov (!%p188_p2), 1  }
   0x7   : > { %1206 = vmatpush3.bf16.msra.mxu0 (!%p188_p2), %v1346_v0  ;;  %1221 = vmatprep.mubr.msk.bf16.mxu0 (!%p188_p2), %vm1403_vm0, %v1402_v1  ;;  %v1352_v9 = vld [vmem:[%s1697_s1 + $0x30] sm:$0xff] (!%p188_p2)   ;;  %v1353_v12 = vld [vmem:[%s1697_s1 + $0x38] sm:$0xff] (!%p188_p2)   ;;  %vm1033_vm2 = vmneg (!%p188_p2), %vm230_vm1  ;;  %vm372_vm5 = vsmask.f32 (!%p188_p2), 7424  ;;  %vm496_vm6 = vcmask (!%p188_p2), 1046528  }
   0x8   : > { %1207 = vmatprep.subr.bf16.mxu0 (!%p188_p2), %v1402_v1  ;;  %1281 = vmatprep.mubr.msk.bf16.mxu1 (!%p188_p2), %vm1403_vm0, %v1402_v1  ;;  %v1370_v14 = vld [vmem:[%s1699_s3] sm:$0xff] (!%p188_p2)   ;;  %v1371_v15 = vld [vmem:[%s1699_s3 + $0x8] sm:$0xff] (!%p188_p2)   ;;  %vm1502_vm4 = vmpackc.low (!%p188_p2), %vm1404_vm3, %vm1033_vm2 }
   0x9   : > { %1266 = vmatpush3.bf16.msra.mxu1 (!%p188_p2), %v1370_v14  ;;  %v1354_v18 = vld [vmem:[%s1697_s1 + $0x40] sm:$0xff] (!%p188_p2)   ;;  %v1372_v19 = vld [vmem:[%s1699_s3 + $0x10] sm:$0xff] (!%p188_p2)   ;;  %v1355_v20 = vld [vmem:[%s1697_s1 + $0x48] sm:$0xff] (!%p188_p2)  }
   0xa   : > { %1267 = vmatprep.subr.bf16.mxu1 (!%p188_p2), %v1402_v1  ;;  %v1373_v21 = vld [vmem:[%s1699_s3 + $0x18] sm:$0xff] (!%p188_p2)   ;;  %v1356_v22 = vld [vmem:[%s1697_s1 + $0x50] sm:$0xff] (!%p188_p2)   ;;  %v1374_v23 = vld [vmem:[%s1699_s3 + $0x20] sm:$0xff] (!%p188_p2)  }
   0xb   : > { %1208 = vmatpush3.bf16.msra.mxu0 (!%p188_p2), %v1347_v2  ;;  %v1357_v24 = vld [vmem:[%s1697_s1 + $0x58] sm:$0xff] (!%p188_p2)   ;;  %v1358_v27 = vld [vmem:[%s1697_s1 + $0x60] sm:$0xff] (!%p188_p2)   ;;  %v1359_v29 = vld [vmem:[%s1697_s1 + $0x68] sm:$0xff] (!%p188_p2)  }
   0xc   : > { %1209 = vmatprep.subr.bf16.mxu0 (!%p188_p2), %v1402_v1  ;;  %v1360_v32 = vld [vmem:[%s1697_s1 + $0x70] sm:$0xff] (!%p188_p2)   ;;  %v1361_v36 = vld [vmem:[%s1697_s1 + $0x78] sm:$0xff] (!%p188_p2)   ;;  %v1362_v40 = vld [vmem:[%s1697_s1 + $0x80] sm:$0xff] (!%p188_p2)  }
   0xd   : > { %s1705_s19 = smov (!%p215_p3, %s1016_s19), 1  ;;  %1268 = vmatpush3.bf16.msra.mxu1 %v1371_v15  ;;  %v1363_v41 = vld [vmem:[%s1697_s1 + $0x88] sm:$0xff]   ;;  %v1364_v42 = vld [vmem:[%s1697_s1 + $0x90] sm:$0xff]   ;;  %v1365_v43 = vld [vmem:[%s1697_s1 + $0x98] sm:$0xff]  }
   0xe   : > { %s1149_s28 = sshll.u32 %s1705_s19, 4  ;;  %1269 = vmatprep.subr.bf16.mxu1 %v1402_v1  ;;  %v1366_v44 = vld [vmem:[%s1697_s1 + $0xa0] sm:$0xff]   ;;  %v1367_v45 = vld [vmem:[%s1697_s1 + $0xa8] sm:$0xff]   ;;  %v1368_v46 = vld [vmem:[%s1697_s1 + $0xb0] sm:$0xff]  }
   0xf   : > { %1210 = vmatpush3.bf16.msra.mxu0 %v1348_v3  ;;  %s219_s8 = scalar_lea.vmem %s1696_s0, %s1149_s28  ;;  %v1369_v47 = vld [vmem:[%s1697_s1 + $0xb8] sm:$0xff]   ;;  %v1375_v51 = vld [vmem:[%s1699_s3 + $0x28] sm:$0xff]   ;;  %v1376_v52 = vld [vmem:[%s1699_s3 + $0x30] sm:$0xff]   ;;  %s224_s13 = scalar_lea.vmem %s1701_s5, %s1149_s28 }
  0x10   : > { %1211 = vmatprep.subr.bf16.mxu0 %v1402_v1  ;;  %v1479_v7 = vld [vmem:[%s219_s8] sm:$0xff]  ;;  %v1482_v8 = vld [vmem:[%s219_s8 + $0x8] sm:$0xff]  ;;  %v1377_v53 = vld [vmem:[%s1699_s3 + $0x38] sm:$0xff]  }
  0x11   : > { %v231_v10 = vrot.slane %v1479_v7, 7  ;;  %v232_v11 = vrot.slane %v1482_v8, 7  ;;  %1270 = vmatpush3.bf16.msra.mxu1 %v1372_v19  ;;  %v1037_v54 = vld [vmem:[%s1698_s2] ss:$0 sm:$0xff]  ;;  %v1379_v14 = vld [vmem:[%s1699_s3 + $0x48] sm:$0xff]   ;;  %v1380_v16 = vld [vmem:[%s1699_s3 + $0x50] sm:$0xff]  }
  0x12   : > { %1271 = vmatprep.subr.bf16.mxu1 %v1402_v1 }
  0x13   : > { %1212 = vmatpush3.bf16.msra.mxu0 %v1349_v4  ;;  %v233_v13 = vsel %vm230_vm1, %v231_v10, %v232_v11  ;;  %v237_v25 = vsel %vm230_vm1, 0.0, %v231_v10  ;;  %v238_v28 = vsel %vm230_vm1, %v232_v11, 0.0 }
  0x14   : > { %1213 = vmatprep.subr.bf16.mxu0 %v1402_v1  ;;  %v1035_v17 = vpack.c.bf16 %v233_v13, %v231_v10  ;;  %v240_v26 = vpack.c.bf16 %v233_v13, %v237_v25  ;;  %v354_v30 = vpack.c.bf16 %v238_v28, %v238_v28  ;;  %v1383_v25 = vld [vmem:[%s1699_s3 + $0x68] sm:$0xff]   ;;  %v1386_v28 = vld [vmem:[%s1699_s3 + $0x80] sm:$0xff]  }
  0x15   : > { %1272 = vmatpush3.bf16.msra.mxu1 %v1373_v21 }
  0x16   : > { %1273 = vmatprep.subr.bf16.mxu1 %v1402_v1  ;;  %v376_v31 = vshll.u32 %v240_v26, 16  ;;  %v374_v33 = vshrl.u32 %v240_v26, 16  ;;  %v381_v35 = vshll.u32 %v354_v30, 16  ;;  %v497_v48 = vrot.slane %v240_v26, 1  ;;  %v1384_v26 = vld [vmem:[%s1699_s3 + $0x70] sm:$0xff]  }
  0x17   : > { %1214 = vmatpush3.bf16.msra.mxu0 %v1350_v5  ;;  %v498_v49 = vrot.slane %v354_v30, 1  ;;  %v1378_v5 = vld [vmem:[%s1699_s3 + $0x40] sm:$0xff]   ;;  %v1388_v30 = vld [vmem:[%s1699_s3 + $0x90] sm:$0xff]  }
  0x18   : > { %1215 = vmatprep.subr.bf16.mxu0 %v1402_v1  ;;  %v378_v34 = vrot.slane %v376_v31, 1  ;;  %v383_v38 = vrot.slane %v381_v35, 1  ;;  %v1389_v31 = vld [vmem:[%s1699_s3 + $0x98] sm:$0xff]  }
  0x19   : > { %1274 = vmatpush3.bf16.msra.mxu1 %v1374_v23  ;;  %v499_v50 = vsel %vm496_vm6, %v497_v48, %v498_v49  ;;  %v1381_v23 = vld [vmem:[%s1699_s3 + $0x58] sm:$0xff]  }
  0x1a   : > { %1275 = vmatprep.subr.bf16.mxu1 %v1402_v1  ;;  %v379_v37 = vor.u32 %v378_v34, %v374_v33  ;;  %v1391_v33 = vld [vmem:[%s1699_s3 + $0xa8] sm:$0xff]   ;;  %v1392_v34 = vld [vmem:[%s1699_s3 + $0xb0] sm:$0xff]   ;;  %v1393_v35 = vld [vmem:[%s1699_s3 + $0xb8] sm:$0xff]  }
  0x1b   : > { %1216 = vmatpush3.bf16.msra.mxu0 %v1351_v6 }
  0x1c   : > { %1217 = vmatprep.subr.bf16.mxu0 %v1402_v1  ;;  %v384_v39 = vsel %vm372_vm5, %v379_v37, %v383_v38 }
  0x1d   : > { %1276 = vmatpush3.bf16.msra.mxu1 %v1375_v51 }
  0x1e   : > { %1277 = vmatprep.subr.bf16.mxu1 %v1402_v1 }
  0x1f   : > { %1218 = vmatpush3.bf16.msra.mxu0 %v1352_v9 }
  0x20   : > { %1219 = vmatprep.subr.bf16.mxu0 %v1402_v1 }
  0x21   : > { %1278 = vmatpush3.bf16.msra.mxu1 %v1376_v52 }
  0x22   : > { %1279 = vmatprep.subr.bf16.mxu1 %v1402_v1 }
  0x23   : > { %1220 = vmatpush3.bf16.msra.mxu0 %v1353_v12 }
  0x24   : > { %1225 = vmatprep.subr.bf16.mxu0 %v1402_v1 }
  0x25   : > { %1280 = vmatpush3.bf16.msra.mxu1 %v1377_v53 }
  0x26   : > { %1222 = vmatmul.mubr.msk.bf16.vlgmr.msra.gmra.mrb[0].mxu0 %vm1502_vm4, %v1035_v17  ;;  %1285 = vmatprep.subr.bf16.mxu1 %v1402_v1 }
  0x27   : > { %1226 = vmatpush3.bf16.msra.mxu0 %v1354_v18  ;;  %1241 = vmatprep.mubr.msk.bf16.mxu0 %vm1403_vm0, %v1402_v1 }
  0x28   : > { %1227 = vmatprep.subr.bf16.mxu0 %v1402_v1 }
  0x2b   : > { %1228 = vmatpush3.bf16.msra.mxu0 %v1355_v20 }
  0x2c   : > { %1229 = vmatprep.subr.bf16.mxu0 %v1402_v1 }
  0x2f   : > { %1230 = vmatpush3.bf16.msra.mxu0 %v1356_v22 }
  0x30   : > { %1231 = vmatprep.subr.bf16.mxu0 %v1402_v1 }
  0x33   : > { %1232 = vmatpush3.bf16.msra.mxu0 %v1357_v24  ;;  %v1382_v24 = vld [vmem:[%s1699_s3 + $0x60] sm:$0xff]  }
  0x34   : > { %1233 = vmatprep.subr.bf16.mxu0 %v1402_v1 }
  0x37   : > { %1234 = vmatpush3.bf16.msra.mxu0 %v1358_v27  ;;  %v1385_v27 = vld [vmem:[%s1699_s3 + $0x78] sm:$0xff]  }
  0x38   : > { %1235 = vmatprep.subr.bf16.mxu0 %v1402_v1 }
  0x3b   : > { %1236 = vmatpush3.bf16.msra.mxu0 %v1359_v29  ;;  %v1387_v29 = vld [vmem:[%s1699_s3 + $0x88] sm:$0xff]  }
  0x3c   : > { %1237 = vmatprep.subr.bf16.mxu0 %v1402_v1 }
  0x3f   : > { %1238 = vmatpush3.bf16.msra.mxu0 %v1360_v32  ;;  %v1390_v32 = vld [vmem:[%s1699_s3 + $0xa0] sm:$0xff]  }
  0x40   : > { %1239 = vmatprep.subr.bf16.mxu0 %v1402_v1 }
  0x43   : > { %1240 = vmatpush3.bf16.msra.mxu0 %v1361_v36 }
  0x44   : > { %1245 = vmatprep.subr.bf16.mxu0 %v1402_v1 }
  0x46   : > { %1242 = vmatmul.mubr.bf16.vlgmr.msra.gmra.mrb[0].mxu0 %v384_v39 }
  0x47   : > { %1246 = vmatpush3.bf16.msra.mxu0 %v1362_v40  ;;  %1261 = vmatprep.mubr.msk.bf16.mxu0 %vm1403_vm0, %v1402_v1  ;;  %v1098_v40 = vld [vmem:[%s1700_s4] ss:$0 sm:$0xff] }
  0x48   : > { %1247 = vmatprep.subr.bf16.mxu0 %v1402_v1 }
  0x4b   : > { %1248 = vmatpush3.bf16.msra.mxu0 %v1363_v41 }
  0x4c   : > { %1249 = vmatprep.subr.bf16.mxu0 %v1402_v1 }
  0x4f   : > { %1250 = vmatpush3.bf16.msra.mxu0 %v1364_v42 }
  0x50   : > { %1251 = vmatprep.subr.bf16.mxu0 %v1402_v1 }
  0x53   : > { %1252 = vmatpush3.bf16.msra.mxu0 %v1365_v43 }
  0x54   : > { %1253 = vmatprep.subr.bf16.mxu0 %v1402_v1 }
  0x57   : > { %1254 = vmatpush3.bf16.msra.mxu0 %v1366_v44 }
  0x58   : > { %1255 = vmatprep.subr.bf16.mxu0 %v1402_v1 }
  0x5b   : > { %1256 = vmatpush3.bf16.msra.mxu0 %v1367_v45 }
  0x5c   : > { %1257 = vmatprep.subr.bf16.mxu0 %v1402_v1 }
  0x5f   : > { %1258 = vmatpush3.bf16.msra.mxu0 %v1368_v46 }
  0x60   : > { %1259 = vmatprep.subr.bf16.mxu0 %v1402_v1 }
  0x63   : > { %1260 = vmatpush3.bf16.msra.mxu0 %v1369_v47 }
  0x66   : > { %1262 = vmatmul.mubr.bf16.vlgmr.msra.gmra.mrb[0].mxu0 %v499_v50 }
 0x139   : > { %v583_v55 = vpop.f32.mrb[0].mxu0 }
 0x13a   : > { %v1325_v56 = vadd.f32 %v1037_v54, %v583_v55  ;;  %v1263_v57 = vpop.f32.mrb[1].mxu0 }
 0x13b   : > { %v586_v58 = vpop.f32.mrb[2].mxu0 }
 0x13c   : > { %v592_v59 = vmax.f32 %v1325_v56, 0.0  ;;  %v1326_v60 = vadd.f32 %v1037_v54, %v586_v58  ;;  %v1264_v61 = vpop.f32.mrb[3].mxu0 }
 0x13e   : > { %v596_v62 = vrot.slane %v592_v59, 7  ;;  %v593_v63 = vmax.f32 %v1326_v60, 0.0 }
 0x140   : > { %v597_v0 = vrot.slane %v593_v63, 7  ;;  %v602_v2 = vsel %vm230_vm1, 0.0, %v596_v62 }
 0x142   : > { %v598_v3 = vsel %vm230_vm1, %v596_v62, %v597_v0  ;;  %v603_v4 = vsel %vm230_vm1, %v597_v0, 0.0 }
 0x143   : > { %v605_v6 = vpack.c.bf16 %v598_v3, %v602_v2  ;;  %v1096_v9 = vpack.c.bf16 %v598_v3, %v596_v62  ;;  %v719_v10 = vpack.c.bf16 %v603_v4, %v603_v4 }
 0x145   : > { %v745_v11 = vshll.u32 %v719_v10, 16  ;;  %v861_v12 = vrot.slane %v719_v10, 1  ;;  %1282 = vmatmul.mubr.msk.bf16.vlgmr.msra.gmra.mrb[0].mxu1 %vm1502_vm4, %v1096_v9  ;;  %v740_v13 = vshll.u32 %v605_v6, 16  ;;  %v860_v15 = vrot.slane %v605_v6, 1 }
 0x146   : > { %1286 = vmatpush3.bf16.msra.mxu1 %v1378_v5  ;;  %1301 = vmatprep.mubr.msk.bf16.mxu1 %vm1403_vm0, %v1402_v1  ;;  %v738_v17 = vshrl.u32 %v605_v6, 16 }
 0x147   : > { %1287 = vmatprep.subr.bf16.mxu1 %v1402_v1  ;;  %v742_v18 = vrot.slane %v740_v13, 1  ;;  %v862_v19 = vsel %vm496_vm6, %v860_v15, %v861_v12  ;;  %v747_v20 = vrot.slane %v745_v11, 1 }
 0x149   : > { %v743_v21 = vor.u32 %v742_v18, %v738_v17 }
 0x14a   : > { %1288 = vmatpush3.bf16.msra.mxu1 %v1379_v14 }
 0x14b   : > { %1289 = vmatprep.subr.bf16.mxu1 %v1402_v1  ;;  %v748_v22 = vsel %vm372_vm5, %v743_v21, %v747_v20 }
 0x14e   : > { %1290 = vmatpush3.bf16.msra.mxu1 %v1380_v16 }
 0x14f   : > { %1291 = vmatprep.subr.bf16.mxu1 %v1402_v1 }
 0x152   : > { %1292 = vmatpush3.bf16.msra.mxu1 %v1381_v23 }
 0x153   : > { %1293 = vmatprep.subr.bf16.mxu1 %v1402_v1 }
 0x156   : > { %1294 = vmatpush3.bf16.msra.mxu1 %v1382_v24 }
 0x157   : > { %1295 = vmatprep.subr.bf16.mxu1 %v1402_v1 }
 0x15a   : > { %1296 = vmatpush3.bf16.msra.mxu1 %v1383_v25 }
 0x15b   : > { %1297 = vmatprep.subr.bf16.mxu1 %v1402_v1 }
 0x15e   : > { %1298 = vmatpush3.bf16.msra.mxu1 %v1384_v26 }
 0x15f   : > { %1299 = vmatprep.subr.bf16.mxu1 %v1402_v1 }
 0x162   : > { %1300 = vmatpush3.bf16.msra.mxu1 %v1385_v27 }
 0x163   : > { %1305 = vmatprep.subr.bf16.mxu1 %v1402_v1 }
 0x165   : > { %1302 = vmatmul.mubr.bf16.vlgmr.msra.gmra.mrb[4].mxu1 %v748_v22 }
 0x166   : > { %1306 = vmatpush3.bf16.msra.mxu1 %v1386_v28  ;;  %1321 = vmatprep.mubr.msk.bf16.mxu1 %vm1403_vm0, %v1402_v1 }
 0x167   : > { %1307 = vmatprep.subr.bf16.mxu1 %v1402_v1 }
 0x16a   : > { %1308 = vmatpush3.bf16.msra.mxu1 %v1387_v29 }
 0x16b   : > { %1309 = vmatprep.subr.bf16.mxu1 %v1402_v1 }
 0x16e   : > { %1310 = vmatpush3.bf16.msra.mxu1 %v1388_v30 }
 0x16f   : > { %1311 = vmatprep.subr.bf16.mxu1 %v1402_v1 }
 0x172   : > { %1312 = vmatpush3.bf16.msra.mxu1 %v1389_v31 }
 0x173   : > { %1313 = vmatprep.subr.bf16.mxu1 %v1402_v1 }
 0x176   : > { %1314 = vmatpush3.bf16.msra.mxu1 %v1390_v32 }
 0x177   : > { %1315 = vmatprep.subr.bf16.mxu1 %v1402_v1 }
 0x17a   : > { %1316 = vmatpush3.bf16.msra.mxu1 %v1391_v33 }
 0x17b   : > { %1317 = vmatprep.subr.bf16.mxu1 %v1402_v1 }
 0x17e   : > { %1318 = vmatpush3.bf16.msra.mxu1 %v1392_v34 }
 0x17f   : > { %1319 = vmatprep.subr.bf16.mxu1 %v1402_v1 }
 0x182   : > { %1320 = vmatpush3.bf16.msra.mxu1 %v1393_v35 }
 0x185   : > { %1322 = vmatmul.mubr.bf16.vlgmr.msra.gmra.mrb[8].mxu1 %v862_v19 }
 0x218   : > { %v704_v36 = vpop.f32.mrb[0].mxu1 }
 0x219   : > { %v1283_v37 = vpop.f32.mrb[1].mxu1  ;;  %v717_v41 = vadd.f32 %v1098_v40, %v704_v36 }
 0x21a   : > { %v707_v38 = vpop.f32.mrb[2].mxu1 }
 0x21b   : > { %v1284_v39 = vpop.f32.mrb[3].mxu1  ;;  %v718_v43 = vadd.f32 %v1098_v40, %v707_v38 }
 0x238   : > { %v832_v42 = vpop.f32.mrb[4].mxu1 }
 0x239   : > { %v839_v44 = vadd.f32 %v832_v42, %v717_v41  ;;  %v1303_v45 = vpop.f32.mrb[5].mxu1 }
 0x23a   : > { %v835_v46 = vpop.f32.mrb[6].mxu1 }
 0x23b   : > { %v840_v47 = vadd.f32 %v835_v46, %v718_v43  ;;  %v1304_v48 = vpop.f32.mrb[7].mxu1 }
 0x258   : > { %v946_v1 = vpop.f32.mrb[8].mxu1 }
 0x259   : > { %v953_v49 = vadd.f32 %v946_v1, %v839_v44  ;;  %v1323_v50 = vpop.f32.mrb[9].mxu1 }
 0x25a   : > { %v949_v51 = vpop.f32.mrb[10].mxu1 }
 0x25b   : > { %v955_v52 = vadd.f32 %v953_v49, %v1479_v7  ;;  %v954_v53 = vadd.f32 %v949_v51, %v840_v47  ;;  %v1324_v54 = vpop.f32.mrb[11].mxu1 }
 0x25d   : > { %v957_v55 = vmax.f32 %v955_v52, 0.0  ;;  %v956_v56 = vadd.f32 %v954_v53, %v1482_v8 }
 0x25f   : > { %959 = vst [vmem:[%s224_s13] sm:$0xff] %v957_v55  ;;  %v958_v57 = vmax.f32 %v956_v56, 0.0 }
 0x261   : > { %960 = vst [vmem:[%s224_s13 + $0x8] sm:$0xff] %v958_v57 }
 0x262 PF: > { %s15_s18 = sadd.s32 1, %s1400_s18  }
 0x263   : > { %p12_p4 = scmp.ge.s32.totalorder %s15_s18, 4  }
 0x265   :  { %14 = sbr.rel (!%p12_p4) target bundleno = 1 (0x1), region = 74 }

</bundles_post_ra>
